<compile_context>
chip_gen: v7x
topology: tpu7x:2x2x1
jax: 0.10.0
libtpu: 0.0.40
codegen_flags: <defaults>
</compile_context>

<pallas_src>
import functools

import jax
import jax.numpy as jnp
from jax.experimental import pallas as pl
from jax.experimental.pallas import tpu as pltpu


# ---------------------------------------------------------------------------
# Kernel
# ---------------------------------------------------------------------------
def _conv1d_3layers_kernel(x_ref, m1_ref, m2_ref, m3_ref, o_ref):
    # x_ref:  (TM, C)  row tile (lane-dense, C on lanes)
    # m*_ref: (C, C)   banded conv matrices, VMEM-resident across the grid
    x = x_ref[...].astype(jnp.float32)
    y = jnp.dot(x, m1_ref[...], preferred_element_type=jnp.float32)
    y = jnp.maximum(y, 0.0)                                   # ReLU
    y = jnp.dot(y, m2_ref[...], preferred_element_type=jnp.float32)
    y = jnp.maximum(y, 0.0)                                   # ReLU
    y = jnp.dot(y, m3_ref[...], preferred_element_type=jnp.float32)
    o_ref[...] = jax.nn.sigmoid(y).astype(o_ref.dtype)        # Sigmoid


# ---------------------------------------------------------------------------
# Wrapper helpers
# ---------------------------------------------------------------------------
def _toeplitz(w, length):
    """Banded matrix M (length, length) s.t. x @ M == conv1d_same(x, w).

    PyTorch Conv1d (cross-correlation, zero padding k//2):
        y[i] = sum_t w[t] * x[i + t - pad]
    so M[j, i] = w[j - i + pad] when 0 <= j - i + pad < k else 0.
    """
    k = w.shape[0]
    pad = k // 2
    j = jnp.arange(length)[:, None]
    i = jnp.arange(length)[None, :]
    tap = j - i + pad
    valid = (tap >= 0) & (tap < k)
    taps = jnp.clip(tap, 0, k - 1)
    return jnp.where(valid, w[taps], 0.0).astype(jnp.float32)


def _choose_row_tile(rows, row_bytes, target_bytes=2 * 1024 * 1024):
    # Whole tensor small -> single block (grid=(1,)); otherwise ~2 MiB row
    # tiles (multiple of 8 sublanes), safe for v5e/v6e/v7x scoped-VMEM limits
    # with double-buffered in + out.
    if rows * row_bytes <= 2 * target_bytes:
        return rows
    tm = max(8, (target_bytes // row_bytes) // 8 * 8)
    return int(min(tm, rows))


@functools.partial(jax.jit, static_argnames=())
def conv1d_3layers(x, w1, w2, w3):
    """Forward pass of Conv1D_3layers.

    x: (B, C, 1, 1); w1/w2/w3: (k,) Conv1d(1,1,k,bias=False) kernels, k odd.
    Returns (B, C, 1, 1), same dtype as x.
    """
    B, C, H, W = x.shape
    assert H == 1 and W == 1, "Conv1D_3layers expects (B, C, 1, 1) input"
    k = w1.shape[0]
    assert w2.shape == (k,) and w3.shape == (k,)
    # TODO(synk): even kernel_size grows the sequence length by 1 per layer in
    # PyTorch; only odd ("same") kernel sizes are supported here.
    assert k % 2 == 1, "only odd kernel_size (same-size conv) is supported"

    # Lane-dense 2-D layout: rows on sublanes, conv axis C on lanes.
    x2d = x.reshape(B, C)

    m1 = _toeplitz(w1, C)
    m2 = _toeplitz(w2, C)
    m3 = _toeplitz(w3, C)

    rows = B
    row_bytes = C * x2d.dtype.itemsize
    tm = _choose_row_tile(rows, row_bytes)
    padded_rows = ((rows + tm - 1) // tm) * tm
    if padded_rows != rows:
        x2d = jnp.pad(x2d, ((0, padded_rows - rows), (0, 0)))

    grid = (padded_rows // tm,)

    cost = pl.CostEstimate(
        flops=int(3 * 2 * padded_rows * C * C),
        transcendentals=int(padded_rows * C),
        bytes_accessed=int(2 * padded_rows * C * x2d.dtype.itemsize
                           + 3 * C * C * 4),
    )

    out2d = pl.pallas_call(
        _conv1d_3layers_kernel,
        out_shape=jax.ShapeDtypeStruct((padded_rows, C), x.dtype),
        grid_spec=pltpu.PrefetchScalarGridSpec(
            num_scalar_prefetch=0,
            grid=grid,
            in_specs=[
                # x: one lane-dense row tile per grid step
                pl.BlockSpec((tm, C), lambda i: (i, 0)),
                # conv matrices: same block every step -> fetched once
                pl.BlockSpec((C, C), lambda i: (0, 0)),
                pl.BlockSpec((C, C), lambda i: (0, 0)),
                pl.BlockSpec((C, C), lambda i: (0, 0)),
            ],
            out_specs=pl.BlockSpec((tm, C), lambda i: (i, 0)),
        ),
        compiler_params=pltpu.CompilerParams(
            dimension_semantics=("parallel",),
        ),
        cost_estimate=cost,
    )(x2d, m1, m2, m3)

    return out2d[:rows].reshape(B, C, 1, 1)


# ---------------------------------------------------------------------------
# Pure-JAX reference (mirrors the PyTorch forward)
# ---------------------------------------------------------------------------
def _ref_conv1d_same(x2d, w):
    k = w.shape[0]
    pad = k // 2
    L = x2d.shape[1]
    xp = jnp.pad(x2d, ((0, 0), (pad, pad)))
    return sum(w[t] * xp[:, t:t + L] for t in range(k))


def _ref_forward(x, w1, w2, w3):
    s = x[:, :, 0, 0]                                   # (B, C)
    y = jnp.maximum(_ref_conv1d_same(s, w1), 0.0)
    y = jnp.maximum(_ref_conv1d_same(y, w2), 0.0)
    y = jax.nn.sigmoid(_ref_conv1d_same(y, w3))
    return y[:, :, None, None]


if __name__ == "__main__":
    key = jax.random.PRNGKey(0)
    B, C, k = 2, 16, 3

    kx, k1, k2, k3 = jax.random.split(key, 4)
    x = jax.random.normal(kx, (B, C, 1, 1), dtype=jnp.float32)
    # Conv1d(1, 1, k, bias=False) weights (out=in=1 channel -> a k-vector).
    w1 = 0.5 * jax.random.normal(k1, (k,), dtype=jnp.float32)
    w2 = 0.5 * jax.random.normal(k2, (k,), dtype=jnp.float32)
    w3 = 0.5 * jax.random.normal(k3, (k,), dtype=jnp.float32)

    out = conv1d_3layers(x, w1, w2, w3)
    out = jax.block_until_ready(out)

    ref = _ref_forward(x, w1, w2, w3)
    assert out.shape == (B, C, 1, 1)
    assert jnp.allclose(out, ref, atol=1e-5, rtol=1e-5), float(
        jnp.max(jnp.abs(out - ref)))

    print("KERNEL_OK")
</pallas_src>

<mosaic_0001>
module attributes {stable_mosaic.version = 11 : i64} {
  func.func @_conv1d_3layers_kernel(%arg0: i32, %arg1: memref<2x16xf32, #tpu.memory_space<vmem>>, %arg2: memref<16x16xf32, #tpu.memory_space<vmem>>, %arg3: memref<16x16xf32, #tpu.memory_space<vmem>>, %arg4: memref<16x16xf32, #tpu.memory_space<vmem>>, %arg5: memref<2x16xf32, #tpu.memory_space<vmem>>) attributes {dimension_semantics = [#tpu.dimension_semantics<parallel>], iteration_bounds = array<i64: 1>, scalar_prefetch = 0 : i64, scratch_operands = 0 : i64, tpu.core_type = #tpu.core_type<tc>, window_params = [{transform_indices = @transform_0, window_bounds = array<i64: 2, 16>}, {pipeline_mode = #tpu.pipeline_mode<synchronous>, transform_indices = @transform_1, window_bounds = array<i64: 16, 16>}, {pipeline_mode = #tpu.pipeline_mode<synchronous>, transform_indices = @transform_2, window_bounds = array<i64: 16, 16>}, {pipeline_mode = #tpu.pipeline_mode<synchronous>, transform_indices = @transform_3, window_bounds = array<i64: 16, 16>}, {transform_indices = @transform_4, window_bounds = array<i64: 2, 16>}]} {
    %c0 = arith.constant 0 : index
    %c0_0 = arith.constant 0 : index
    %0 = vector.load %arg1[%c0, %c0_0] : memref<2x16xf32, #tpu.memory_space<vmem>>, vector<2x16xf32>
    %c0_1 = arith.constant 0 : index
    %c0_2 = arith.constant 0 : index
    %1 = vector.load %arg2[%c0_1, %c0_2] : memref<16x16xf32, #tpu.memory_space<vmem>>, vector<16x16xf32>
    %cst = arith.constant dense<0.000000e+00> : vector<2x16xf32>
    %2 = tpu.matmul %0, %1, %cst {dimension_numbers = #tpu.dot_dimension_numbers<[1], [0], [0], [1], [0, 0, 1, 1], [], []>} : vector<2x16xf32>, vector<16x16xf32>, vector<2x16xf32> -> vector<2x16xf32>
    %cst_3 = arith.constant 0.000000e+00 : f32
    %3 = vector.broadcast %cst_3 : f32 to vector<2x16xf32>
    %4 = arith.maximumf %2, %3 : vector<2x16xf32>
    %c0_4 = arith.constant 0 : index
    %c0_5 = arith.constant 0 : index
    %5 = vector.load %arg3[%c0_4, %c0_5] : memref<16x16xf32, #tpu.memory_space<vmem>>, vector<16x16xf32>
    %cst_6 = arith.constant dense<0.000000e+00> : vector<2x16xf32>
    %6 = tpu.matmul %4, %5, %cst_6 {dimension_numbers = #tpu.dot_dimension_numbers<[1], [0], [0], [1], [0, 0, 1, 1], [], []>} : vector<2x16xf32>, vector<16x16xf32>, vector<2x16xf32> -> vector<2x16xf32>
    %cst_7 = arith.constant 0.000000e+00 : f32
    %7 = vector.broadcast %cst_7 : f32 to vector<2x16xf32>
    %8 = arith.maximumf %6, %7 : vector<2x16xf32>
    %c0_8 = arith.constant 0 : index
    %c0_9 = arith.constant 0 : index
    %9 = vector.load %arg4[%c0_8, %c0_9] : memref<16x16xf32, #tpu.memory_space<vmem>>, vector<16x16xf32>
    %cst_10 = arith.constant dense<0.000000e+00> : vector<2x16xf32>
    %10 = tpu.matmul %8, %9, %cst_10 {dimension_numbers = #tpu.dot_dimension_numbers<[1], [0], [0], [1], [0, 0, 1, 1], [], []>} : vector<2x16xf32>, vector<16x16xf32>, vector<2x16xf32> -> vector<2x16xf32>
    %11 = arith.negf %10 : vector<2x16xf32>
    %12 = math.exp %11 : vector<2x16xf32>
    %cst_11 = arith.constant 1.000000e+00 : f32
    %13 = vector.broadcast %cst_11 : f32 to vector<2x16xf32>
    %14 = arith.addf %13, %12 : vector<2x16xf32>
    %15 = arith.divf %13, %14 : vector<2x16xf32>
    %c0_12 = arith.constant 0 : index
    %c0_13 = arith.constant 0 : index
    %16 = vector.load %arg5[%c0_12, %c0_13] : memref<2x16xf32, #tpu.memory_space<vmem>>, vector<2x16xf32>
    tpu.vector_store %arg5[%c0_12, %c0_13], %15 {strides = array<i32>} : memref<2x16xf32, #tpu.memory_space<vmem>>, vector<2x16xf32>,
    return
  }
  func.func @transform_0(%arg0: i32) -> (i32, i32) {
    %c0_i32 = arith.constant 0 : i32
    %c0_i32_0 = arith.constant 0 : i32
    return %arg0, %c0_i32 : i32, i32
  }
  func.func @transform_1(%arg0: i32) -> (i32, i32) {
    %c0_i32 = arith.constant 0 : i32
    %c0_i32_0 = arith.constant 0 : i32
    %c0_i32_1 = arith.constant 0 : i32
    return %c0_i32, %c0_i32_0 : i32, i32
  }
  func.func @transform_2(%arg0: i32) -> (i32, i32) {
    %c0_i32 = arith.constant 0 : i32
    %c0_i32_0 = arith.constant 0 : i32
    %c0_i32_1 = arith.constant 0 : i32
    return %c0_i32, %c0_i32_0 : i32, i32
  }
  func.func @transform_3(%arg0: i32) -> (i32, i32) {
    %c0_i32 = arith.constant 0 : i32
    %c0_i32_0 = arith.constant 0 : i32
    %c0_i32_1 = arith.constant 0 : i32
    return %c0_i32, %c0_i32_0 : i32, i32
  }
  func.func @transform_4(%arg0: i32) -> (i32, i32) {
    %c0_i32 = arith.constant 0 : i32
    %c0_i32_0 = arith.constant 0 : i32
    return %arg0, %c0_i32 : i32, i32
  }
}

</mosaic_0001>

<bundles_post_ra>
// kernel: conv1d_3layers.1
= control target key start
LH: loop header
LB: loop body
LE: loop exit
PB: predicated region body
PF: predicated region fallthrough
CT: control target
= control target key end

     0   :  { %v344_v2 = vmov 0.0|0.0   ;;  %vm345_vm0 = vmmov 0   ;;  %v346_v4 = vmov 0.0   ;;  %s409_s0 = inlined_call_operand.vmem [shape: f32[2,16], index: 0, kind: input, shape index: {}]   ;;  %s410_s1 = inlined_call_operand.vmem [shape: f32[16,16], index: 1, kind: input, shape index: {}]   ;;  %s411_s2 = inlined_call_operand.vmem [shape: f32[16,16], index: 2, kind: input, shape index: {}]   ;;  %s412_s3 = inlined_call_operand.vmem [shape: f32[16,16], index: 3, kind: input, shape index: {}]   ;;  %s413_s4 = inlined_call_operand.hbm [shape: f32[2,16], index: 4, kind: output, shape index: {}]  }
   0x1   :  { %v19_v0 = vld [vmem:[%s410_s1] sm:$0xff]  ;;  %v20_v1 = vld [vmem:[%s410_s1 + $0x8] sm:$0xff]  ;;  %303 = vmatprep.subr.bf16.mxu0 %v344_v2  ;;  %286 = vmatprep.mubr.msk.f32.mxu0 %vm345_vm0, %v346_v4 }
   0x2   :  { %v304_v3 = vpack.c.bf16 %v20_v1, %v19_v0 }
   0x3   :  { %9 = vsyncpa [#allocation3], 0  ;;  %306 = vmatprep.subr.bf16.mxu1 %v344_v2  ;;  %293 = vmatprep.mubr.msk.f32.mxu1 %vm345_vm0, %v346_v4  ;;  %v18_v5 = vld [vmem:[%s409_s0] sm:$0x3]  ;;  %vm21_vm1 = vcmask 130048   ;;  %v97_v7 = vld [vmem:[%s411_s2 + $0x8] sm:$0xff] }
   0x4   :  { %305 = vmatpush3.bf16.msra.mxu0 %v304_v3  ;;  %v96_v6 = vld [vmem:[%s411_s2] sm:$0xff]  ;;  %v173_v10 = vld [vmem:[%s412_s3 + $0x8] sm:$0xff]  ;;  %s347_s2 = smov [#allocation2]   ;;  %vm253_vm2 = vcmask 123904  }
   0x5   :  { %309 = vmatprep.subr.bf16.mxu0 %v344_v2  ;;  %v307_v8 = vpack.c.bf16 %v97_v7, %v96_v6  ;;  %v172_v9 = vld [vmem:[%s412_s3] sm:$0xff]  ;;  %s261_s3 = sshll.u32 %s347_s2, 4  ;;  %s262_s3 = int_to_ptr.vmem [resolvable:$true] %s261_s3 }
   0x6   :  { %v310_v11 = vpack.c.bf16 %v173_v10, %v172_v9  ;;  %s320_s27 = scalar_lea.vmem %s262_s3, 32  ;;  %p325_p1 = scmp.lt.s32.totalorder %s262_s3, %s262_s3 }
   0x7   :  { %287 = vmatmul.mubr.msk.f32.vlgmr.msra.gmra.mrb[0].mxu0 %vm21_vm1, %v18_v5  ;;  %308 = vmatpush3.bf16.msra.mxu1 %v307_v8  ;;  %p321_p0 = scmp.ne.s32.totalorder %s262_s3, %s320_s27  ;;  %p326_p2 = scmp.lt.s32.totalorder %s320_s27, %s320_s27 }
   0x8   :  { %300 = vmatprep.mubr.msk.f32.mxu0 %vm345_vm0, %v346_v4  ;;  %311 = vmatpush3.bf16.msra.mxu0 %v310_v11 }
   0x9   :  { %p327_p3 = por %p326_p2, %p325_p1 }
   0xb   :  { %p328_p4 = pnand %p327_p3, %p321_p0 }
  0xda   :  { %v91_v12 = vpop.f32.mrb[0].mxu0 }
  0xdb   :  { %v95_v13 = vmax.f32 %v91_v12, 0.0  ;;  %v288_v14 = vpop.f32.mrb[1].mxu0 }
  0xdd   :  { %294 = vmatmul.mubr.msk.f32.vlgmr.msra.gmra.mrb[0].mxu1 %vm21_vm1, %v95_v13 }
 0x1b0   :  { %v167_v15 = vpop.f32.mrb[0].mxu1 }
 0x1b1   :  { %v171_v16 = vmax.f32 %v167_v15, 0.0  ;;  %v295_v17 = vpop.f32.mrb[1].mxu1 }
 0x1b3   :  { %301 = vmatmul.mubr.msk.f32.vlgmr.msra.gmra.mrb[2].mxu0 %vm21_vm1, %v171_v16 }
 0x286   :  { %v243_v18 = vpop.f32.mrb[2].mxu0 }
 0x287   :  { %v272_v19 = vmul.f32 -1.442695, %v243_v18  ;;  %v302_v20 = vpop.f32.mrb[3].mxu0 }
 0x289   :  { %316 = vpow2.f32 %v272_v19 }
 0x293   :  { %v317_v21 = vpop.eup %316 }
 0x294   :  { %v250_v22 = vadd.f32 1.0, %v317_v21 }
 0x296   :  { %318 = vrcp.f32 %v250_v22 }
 0x2a0   :  { %v319_v23 = vpop.eup %318 }
 0x2a1   :  { %254 = vst.msk [vmem:[#allocation2] sm:$0x3] %vm253_vm2, %v319_v23 }
 0x2a2   :  { %331 = shalt.err (!%p328_p4)
}
 0x2a3   :  { %s332_s30 = scalar_lea.hbm %s413_s4, 32 }
 0x2a4   :  { %p333_p5 = scmp.ne.s32.totalorder %s413_s4, %s332_s30  ;;  %p336_p6 = scmp.lt.u32.totalorder %s332_s30, %s413_s4 }
 0x2a6   :  { %p338_p7 = pnand %p336_p6, %p333_p5 }
 0x2a8   :  { %341 = shalt.err (!%p338_p7)
}
 0x2a9   :  { %264 = dma.vmem_to_hbm [thread:$0]  %s262_s3, 32, %s413_s4, [#allocation3]  }
 0x2aa   :  { %342 = dma.done.wait [#allocation3], 32  }
 0x2ab   :  { %343 = vsyncadd [#allocation3], 4294967264 }
 0x2ac   :  { %268 = vsyncpa [#allocation3], 1 }

</bundles_post_ra>
